<compile_context>
chip_gen: v6e
topology: v6e:2x2x1
jax: 0.10.0
libtpu: 0.0.40
codegen_flags: <defaults>
</compile_context>

<pallas_src>
import math
from functools import partial

import jax
import jax.numpy as jnp
from jax import lax
from jax.experimental import pallas as pl
from jax.experimental.pallas import tpu as pltpu


def heads_kernel(q_ref, k_ref, v_ref, w_ref, b_ref, o_ref, *, h, dk, use_bf16):
    """One grid step: `block_b` batch elements of fused-QKV multi-head attention.

    q_ref/k_ref/v_ref: (B, T, D)    w_ref: (D, 3D)    b_ref: (1, 3D)
    o_ref:             (B, T*D)     (lane-dense output slab, T*D multiple of 128)
    """
    B, T, D = q_ref.shape
    rows = B * T

    # ---- Fused QKV projection: one row-rich MXU matmul per grid step. ----
    # Stack the three row tiles along sublanes (each (B*T, D) tile is 8-sublane
    # aligned for T=8, so this is vreg placement, not a relayout).
    x = jnp.concatenate(
        [q_ref[...].reshape(rows, D),
         k_ref[...].reshape(rows, D),
         v_ref[...].reshape(rows, D)], axis=0)                   # (3*rows, D)
    if use_bf16:
        x = x.astype(jnp.bfloat16)                               # MXU-native; f32 acc
    proj = jnp.dot(x, w_ref[...],
                   preferred_element_type=jnp.float32) + b_ref[...]  # (3*rows, 3D)

    # Block-diagonal slices: Q rows x Wq cols, K rows x Wk cols, V rows x Wv cols.
    # The 1/sqrt(dk) attention scale is already folded into the Wq/bq columns.
    qL = proj[0 * rows:1 * rows, 0 * D:1 * D].reshape(B, T, D)
    kL = proj[1 * rows:2 * rows, 1 * D:2 * D].reshape(B, T, D)
    vL = proj[2 * rows:3 * rows, 2 * D:3 * D].reshape(B, T, D)

    # ---- Per-head attention (static unrolled loop; see header note). ----
    outs = []
    for i in range(h):
        s = slice(i * dk, (i + 1) * dk)
        qh, kh, vh = qL[:, :, s], kL[:, :, s], vL[:, :, s]       # (B, T, dk)
        if use_bf16:
            qh = qh.astype(jnp.bfloat16)
            kh = kh.astype(jnp.bfloat16)
        # Contract the last dims directly (no materialized K transpose).
        logits = lax.dot_general(
            qh, kh, dimension_numbers=(((2,), (2,)), ((0,), (0,))),
            preferred_element_type=jnp.float32)                  # (B, T, T)
        m = jnp.max(logits, axis=-1, keepdims=True)
        e = jnp.exp(logits - m)
        denom = jnp.sum(e, axis=-1, keepdims=True)               # (B, T, 1)
        p = e.astype(jnp.bfloat16) if use_bf16 else e
        vv = vh.astype(jnp.bfloat16) if use_bf16 else vh
        ctx = lax.dot_general(
            p, vv, dimension_numbers=(((2,), (1,)), ((0,), (0,))),
            preferred_element_type=jnp.float32)                  # (B, T, dk)
        # Exact normalization after the P@V matmul (linear in P -> identical
        # result); normalizes (T, dk) values instead of (T, T) logits.
        outs.append(ctx / denom)

    out = jnp.concatenate(outs, axis=-1)                         # (B, T, D)
    # Single lane-dense store per grid step.
    o_ref[...] = out.reshape(B, T * D).astype(o_ref.dtype)


def _tensorcores_per_chip():
    """Best-effort TensorCore count per chip (v7x has 2; v5e/v6e have 1)."""
    try:
        kind = jax.devices()[0].device_kind.lower()
        if "v7" in kind or "7x" in kind:
            return 2
    except Exception:
        pass
    return 1


def heads_forward(Q, K, V, params, *, h, dk, block_b=None, use_bf16_matmul=None):
    """Q, K, V: [N, T, d_model] float32.  params: torch-layout weights/biases."""
    N, T, D = Q.shape
    assert h * dk == D

    if use_bf16_matmul is None:
        # MXU is natively bf16 on v5e/v6e/v7x, but at D=32 the kernel is
        # layout/overhead-bound and bf16 operands cannot pay for themselves.
        use_bf16_matmul = D >= 512

    # Host-side weight prep (free): fuse the three nn.Linear weights, fold the
    # 1/sqrt(dk) attention scale into the Q columns (linear => identical math).
    scale = 1.0 / math.sqrt(dk)
    w_fused = jnp.concatenate(
        [params["wq"].T * scale, params["wk"].T, params["wv"].T], axis=1)   # (D, 3D)
    b_fused = jnp.concatenate(
        [params["bq"] * scale, params["bk"], params["bv"]]).reshape(1, 3 * D)
    if use_bf16_matmul:
        w_fused = w_fused.astype(jnp.bfloat16)

    # ---- Generation-aware block_b heuristic ----
    if block_b is None:
        target_rows = 256                          # fill the 256-wide MXU row dim
        target_b = max(1, target_rows // max(T, 1))
        block_b = min(N, target_b)                 # one big step on 1-TC chips
        if _tensorcores_per_chip() >= 2 and pl.cdiv(N, block_b) == 1 and N > 1:
            # v7x: split across the two TensorCores only if each half still
            # keeps the MXU row-rich; otherwise one step beats the extra
            # ~0.35 us pipeline boundary.
            half = pl.cdiv(N, 2)
            if half * T >= target_rows:
                block_b = half
    grid_n = pl.cdiv(N, block_b)
    if grid_n > 1 and block_b % 8 != 0:
        # Keep the (block_b, T*D) output block sublane-aligned when it does not
        # span the whole batch.
        block_b = ((block_b + 7) // 8) * 8
        grid_n = pl.cdiv(N, block_b)
    Np = grid_n * block_b
    if Np != N:
        # Padded rows compute softmax over zero logits (uniform attention) and
        # are sliced off below; acceptable while Np - N < block_b.
        pad = ((0, Np - N), (0, 0), (0, 0))
        Q, K, V = jnp.pad(Q, pad), jnp.pad(K, pad), jnp.pad(V, pad)

    seq_spec = pl.BlockSpec((block_b, T, D), lambda b: (b, 0, 0))
    w_spec = pl.BlockSpec((D, 3 * D), lambda b: (0, 0))
    b_spec = pl.BlockSpec((1, 3 * D), lambda b: (0, 0))
    out_spec = pl.BlockSpec((block_b, T * D), lambda b: (b, 0))  # lane-dense slab

    # Advisory cost model so XLA can overlap this small call with surrounding HLO.
    cost = pl.CostEstimate(
        flops=int(2 * (3 * Np * T) * D * (3 * D) + 4 * Np * h * T * T * dk),
        transcendentals=int(Np * h * T * T),
        bytes_accessed=int(4 * (4 * Np * T * D)
                           + w_fused.size * w_fused.dtype.itemsize
                           + 4 * b_fused.size),
    )

    out = pl.pallas_call(
        partial(heads_kernel, h=h, dk=dk, use_bf16=use_bf16_matmul),
        out_shape=jax.ShapeDtypeStruct((Np, T * D), Q.dtype),
        grid_spec=pltpu.PrefetchScalarGridSpec(
            num_scalar_prefetch=0,
            grid=(grid_n,),
            in_specs=[seq_spec, seq_spec, seq_spec, w_spec, b_spec],
            out_specs=out_spec,
        ),
        compiler_params=pltpu.CompilerParams(
            dimension_semantics=("parallel",),
            # Tiny tiles fit every generation's scoped default.  For production
            # d_model on v7x (64 MiB VMEM/TC): single-buffer the grid-invariant
            # fused weight and re-derive block_b before raising this.
            vmem_limit_bytes=32 * 1024 * 1024,
        ),
        cost_estimate=cost,
    )(Q, K, V, w_fused, b_fused)

    return out.reshape(Np, T, D)[:N]


def heads_reference(Q, K, V, params, *, h, dk):
    """Plain-JAX reference matching the PyTorch module (eval mode)."""
    N, T, D = Q.shape
    qL = Q @ params["wq"].T + params["bq"]
    kL = K @ params["wk"].T + params["bk"]
    vL = V @ params["wv"].T + params["bv"]
    qh = qL.reshape(N, T, h, dk).transpose(0, 2, 1, 3)
    kh = kL.reshape(N, T, h, dk).transpose(0, 2, 1, 3)
    vh = vL.reshape(N, T, h, dk).transpose(0, 2, 1, 3)
    logits = jnp.einsum("nhqd,nhkd->nhqk", qh, kh) / math.sqrt(dk)
    p = jax.nn.softmax(logits, axis=-1)
    out = jnp.einsum("nhqk,nhkd->nhqd", p, vh)
    return out.transpose(0, 2, 1, 3).reshape(N, T, D)


if __name__ == "__main__":
    # Small shapes consistent with the module: batch=2, seq=8, d_model=32,
    # heads h=4, per-head dk=8 (h * dk == d_model).
    N, T, D = 2, 8, 32
    H, DK = 4, 8

    key = jax.random.PRNGKey(0)
    keys = jax.random.split(key, 9)
    Q = jax.random.normal(keys[0], (N, T, D), dtype=jnp.float32)
    K = jax.random.normal(keys[1], (N, T, D), dtype=jnp.float32)
    V = jax.random.normal(keys[2], (N, T, D), dtype=jnp.float32)

    # Deterministic parameter init (nn.Linear layout: weight [out, in], bias [out]).
    lim = 1.0 / math.sqrt(D)
    params = {
        "wq": jax.random.uniform(keys[3], (D, D), jnp.float32, -lim, lim),
        "bq": jax.random.uniform(keys[4], (D,), jnp.float32, -lim, lim),
        "wk": jax.random.uniform(keys[5], (D, D), jnp.float32, -lim, lim),
        "bk": jax.random.uniform(keys[6], (D,), jnp.float32, -lim, lim),
        "wv": jax.random.uniform(keys[7], (D, D), jnp.float32, -lim, lim),
        "bv": jax.random.uniform(keys[8], (D,), jnp.float32, -lim, lim),
    }

    out = heads_forward(Q, K, V, params, h=H, dk=DK)
    out = jax.block_until_ready(out)

    ref = heads_reference(Q, K, V, params, h=H, dk=DK)
    assert out.shape == (N, T, D)
    # Exact softmax normalization restores a tight tolerance (was 1e-3 with the
    # approximate reciprocal); small residual is f32-accumulated MXU rounding.
    assert jnp.allclose(out, ref, atol=3e-5, rtol=3e-5), "mismatch vs reference"

    print("KERNEL_OK")
</pallas_src>

<mosaic_0001>
module attributes {stable_mosaic.version = 11 : i64} {
  func.func @heads_kernel(%arg0: i32, %arg1: memref<2x8x32xf32, #tpu.memory_space<vmem>>, %arg2: memref<2x8x32xf32, #tpu.memory_space<vmem>>, %arg3: memref<2x8x32xf32, #tpu.memory_space<vmem>>, %arg4: memref<32x96xf32, #tpu.memory_space<vmem>>, %arg5: memref<1x96xf32, #tpu.memory_space<vmem>>, %arg6: memref<2x256xf32, #tpu.memory_space<vmem>>) attributes {dimension_semantics = [#tpu.dimension_semantics<parallel>], iteration_bounds = array<i64: 1>, scalar_prefetch = 0 : i64, scratch_operands = 0 : i64, tpu.core_type = #tpu.core_type<tc>, window_params = [{transform_indices = @transform_0, window_bounds = array<i64: 2, 8, 32>}, {transform_indices = @transform_1, window_bounds = array<i64: 2, 8, 32>}, {transform_indices = @transform_2, window_bounds = array<i64: 2, 8, 32>}, {pipeline_mode = #tpu.pipeline_mode<synchronous>, transform_indices = @transform_3, window_bounds = array<i64: 32, 96>}, {pipeline_mode = #tpu.pipeline_mode<synchronous>, transform_indices = @transform_4, window_bounds = array<i64: 1, 96>}, {transform_indices = @transform_5, window_bounds = array<i64: 2, 256>}]} {
    %c0 = arith.constant 0 : index
    %c0_0 = arith.constant 0 : index
    %c0_1 = arith.constant 0 : index
    %0 = vector.load %arg1[%c0, %c0_0, %c0_1] : memref<2x8x32xf32, #tpu.memory_space<vmem>>, vector<2x8x32xf32>
    %1 = vector.shape_cast %0 : vector<2x8x32xf32> to vector<16x32xf32>
    %c0_2 = arith.constant 0 : index
    %c0_3 = arith.constant 0 : index
    %c0_4 = arith.constant 0 : index
    %2 = vector.load %arg2[%c0_2, %c0_3, %c0_4] : memref<2x8x32xf32, #tpu.memory_space<vmem>>, vector<2x8x32xf32>
    %3 = vector.shape_cast %2 : vector<2x8x32xf32> to vector<16x32xf32>
    %c0_5 = arith.constant 0 : index
    %c0_6 = arith.constant 0 : index
    %c0_7 = arith.constant 0 : index
    %4 = vector.load %arg3[%c0_5, %c0_6, %c0_7] : memref<2x8x32xf32, #tpu.memory_space<vmem>>, vector<2x8x32xf32>
    %5 = vector.shape_cast %4 : vector<2x8x32xf32> to vector<16x32xf32>
    %6 = tpu.concatenate %1, %3, %5 in 0 : vector<16x32xf32>, vector<16x32xf32>, vector<16x32xf32> -> vector<48x32xf32>
    %c0_8 = arith.constant 0 : index
    %c0_9 = arith.constant 0 : index
    %7 = vector.load %arg4[%c0_8, %c0_9] : memref<32x96xf32, #tpu.memory_space<vmem>>, vector<32x96xf32>
    %cst = arith.constant dense<0.000000e+00> : vector<48x96xf32>
    %8 = tpu.matmul %6, %7, %cst {dimension_numbers = #tpu.dot_dimension_numbers<[1], [0], [0], [1], [0, 0, 1, 1], [], []>} : vector<48x32xf32>, vector<32x96xf32>, vector<48x96xf32> -> vector<48x96xf32>
    %c0_10 = arith.constant 0 : index
    %c0_11 = arith.constant 0 : index
    %9 = vector.load %arg5[%c0_10, %c0_11] : memref<1x96xf32, #tpu.memory_space<vmem>>, vector<1x96xf32>
    %10 = vector.broadcast %9 : vector<1x96xf32> to vector<48x96xf32>
    %11 = arith.addf %8, %10 : vector<48x96xf32>
    %12 = vector.extract_strided_slice %11 {offsets = [0, 0], sizes = [16, 32], strides = [1, 1]} : vector<48x96xf32> to vector<16x32xf32>
    %13 = vector.shape_cast %12 : vector<16x32xf32> to vector<2x8x32xf32>
    %14 = vector.extract_strided_slice %11 {offsets = [16, 32], sizes = [16, 32], strides = [1, 1]} : vector<48x96xf32> to vector<16x32xf32>
    %15 = vector.shape_cast %14 : vector<16x32xf32> to vector<2x8x32xf32>
    %16 = vector.extract_strided_slice %11 {offsets = [32, 64], sizes = [16, 32], strides = [1, 1]} : vector<48x96xf32> to vector<16x32xf32>
    %17 = vector.shape_cast %16 : vector<16x32xf32> to vector<2x8x32xf32>
    %18 = vector.extract_strided_slice %13 {offsets = [0, 0, 0], sizes = [2, 8, 8], strides = [1, 1, 1]} : vector<2x8x32xf32> to vector<2x8x8xf32>
    %19 = vector.extract_strided_slice %15 {offsets = [0, 0, 0], sizes = [2, 8, 8], strides = [1, 1, 1]} : vector<2x8x32xf32> to vector<2x8x8xf32>
    %20 = vector.extract_strided_slice %17 {offsets = [0, 0, 0], sizes = [2, 8, 8], strides = [1, 1, 1]} : vector<2x8x32xf32> to vector<2x8x8xf32>
    %cst_12 = arith.constant dense<0.000000e+00> : vector<2x8x8xf32>
    %21 = tpu.matmul %18, %19, %cst_12 {dimension_numbers = #tpu.dot_dimension_numbers<[2], [2], [1], [1], [0, 0, 0, 1, 1, 1], [0], [0]>} : vector<2x8x8xf32>, vector<2x8x8xf32>, vector<2x8x8xf32> -> vector<2x8x8xf32>
    %cst_13 = arith.constant dense<0xFF800000> : vector<2x8xf32>
    %22 = vector.multi_reduction <maximumf>, %21, %cst_13 [2] : vector<2x8x8xf32> to vector<2x8xf32>
    %23 = vector.shape_cast %22 : vector<2x8xf32> to vector<2x8x1xf32>
    %24 = vector.broadcast %23 : vector<2x8x1xf32> to vector<2x8x8xf32>
    %25 = arith.subf %21, %24 : vector<2x8x8xf32>
    %26 = math.exp %25 : vector<2x8x8xf32>
    %cst_14 = arith.constant dense<0.000000e+00> : vector<2x8xf32>
    %27 = vector.multi_reduction <add>, %26, %cst_14 [2] : vector<2x8x8xf32> to vector<2x8xf32>
    %28 = vector.shape_cast %27 : vector<2x8xf32> to vector<2x8x1xf32>
    %cst_15 = arith.constant dense<0.000000e+00> : vector<2x8x8xf32>
    %29 = tpu.matmul %26, %20, %cst_15 {dimension_numbers = #tpu.dot_dimension_numbers<[2], [1], [1], [2], [0, 0, 0, 1, 1, 2], [0], [0]>} : vector<2x8x8xf32>, vector<2x8x8xf32>, vector<2x8x8xf32> -> vector<2x8x8xf32>
    %30 = vector.broadcast %28 : vector<2x8x1xf32> to vector<2x8x8xf32>
    %31 = arith.divf %29, %30 : vector<2x8x8xf32>
    %32 = vector.extract_strided_slice %13 {offsets = [0, 0, 8], sizes = [2, 8, 8], strides = [1, 1, 1]} : vector<2x8x32xf32> to vector<2x8x8xf32>
    %33 = vector.extract_strided_slice %15 {offsets = [0, 0, 8], sizes = [2, 8, 8], strides = [1, 1, 1]} : vector<2x8x32xf32> to vector<2x8x8xf32>
    %34 = vector.extract_strided_slice %17 {offsets = [0, 0, 8], sizes = [2, 8, 8], strides = [1, 1, 1]} : vector<2x8x32xf32> to vector<2x8x8xf32>
    %cst_16 = arith.constant dense<0.000000e+00> : vector<2x8x8xf32>
    %35 = tpu.matmul %32, %33, %cst_16 {dimension_numbers = #tpu.dot_dimension_numbers<[2], [2], [1], [1], [0, 0, 0, 1, 1, 1], [0], [0]>} : vector<2x8x8xf32>, vector<2x8x8xf32>, vector<2x8x8xf32> -> vector<2x8x8xf32>
    %cst_17 = arith.constant dense<0xFF800000> : vector<2x8xf32>
    %36 = vector.multi_reduction <maximumf>, %35, %cst_17 [2] : vector<2x8x8xf32> to vector<2x8xf32>
    %37 = vector.shape_cast %36 : vector<2x8xf32> to vector<2x8x1xf32>
    %38 = vector.broadcast %37 : vector<2x8x1xf32> to vector<2x8x8xf32>
    %39 = arith.subf %35, %38 : vector<2x8x8xf32>
    %40 = math.exp %39 : vector<2x8x8xf32>
    %cst_18 = arith.constant dense<0.000000e+00> : vector<2x8xf32>
    %41 = vector.multi_reduction <add>, %40, %cst_18 [2] : vector<2x8x8xf32> to vector<2x8xf32>
    %42 = vector.shape_cast %41 : vector<2x8xf32> to vector<2x8x1xf32>
    %cst_19 = arith.constant dense<0.000000e+00> : vector<2x8x8xf32>
    %43 = tpu.matmul %40, %34, %cst_19 {dimension_numbers = #tpu.dot_dimension_numbers<[2], [1], [1], [2], [0, 0, 0, 1, 1, 2], [0], [0]>} : vector<2x8x8xf32>, vector<2x8x8xf32>, vector<2x8x8xf32> -> vector<2x8x8xf32>
    %44 = vector.broadcast %42 : vector<2x8x1xf32> to vector<2x8x8xf32>
    %45 = arith.divf %43, %44 : vector<2x8x8xf32>
    %46 = vector.extract_strided_slice %13 {offsets = [0, 0, 16], sizes = [2, 8, 8], strides = [1, 1, 1]} : vector<2x8x32xf32> to vector<2x8x8xf32>
    %47 = vector.extract_strided_slice %15 {offsets = [0, 0, 16], sizes = [2, 8, 8], strides = [1, 1, 1]} : vector<2x8x32xf32> to vector<2x8x8xf32>
    %48 = vector.extract_strided_slice %17 {offsets = [0, 0, 16], sizes = [2, 8, 8], strides = [1, 1, 1]} : vector<2x8x32xf32> to vector<2x8x8xf32>
    %cst_20 = arith.constant dense<0.000000e+00> : vector<2x8x8xf32>
    %49 = tpu.matmul %46, %47, %cst_20 {dimension_numbers = #tpu.dot_dimension_numbers<[2], [2], [1], [1], [0, 0, 0, 1, 1, 1], [0], [0]>} : vector<2x8x8xf32>, vector<2x8x8xf32>, vector<2x8x8xf32> -> vector<2x8x8xf32>
    %cst_21 = arith.constant dense<0xFF800000> : vector<2x8xf32>
    %50 = vector.multi_reduction <maximumf>, %49, %cst_21 [2] : vector<2x8x8xf32> to vector<2x8xf32>
    %51 = vector.shape_cast %50 : vector<2x8xf32> to vector<2x8x1xf32>
    %52 = vector.broadcast %51 : vector<2x8x1xf32> to vector<2x8x8xf32>
    %53 = arith.subf %49, %52 : vector<2x8x8xf32>
    %54 = math.exp %53 : vector<2x8x8xf32>
    %cst_22 = arith.constant dense<0.000000e+00> : vector<2x8xf32>
    %55 = vector.multi_reduction <add>, %54, %cst_22 [2] : vector<2x8x8xf32> to vector<2x8xf32>
    %56 = vector.shape_cast %55 : vector<2x8xf32> to vector<2x8x1xf32>
    %cst_23 = arith.constant dense<0.000000e+00> : vector<2x8x8xf32>
    %57 = tpu.matmul %54, %48, %cst_23 {dimension_numbers = #tpu.dot_dimension_numbers<[2], [1], [1], [2], [0, 0, 0, 1, 1, 2], [0], [0]>} : vector<2x8x8xf32>, vector<2x8x8xf32>, vector<2x8x8xf32> -> vector<2x8x8xf32>
    %58 = vector.broadcast %56 : vector<2x8x1xf32> to vector<2x8x8xf32>
    %59 = arith.divf %57, %58 : vector<2x8x8xf32>
    %60 = vector.extract_strided_slice %13 {offsets = [0, 0, 24], sizes = [2, 8, 8], strides = [1, 1, 1]} : vector<2x8x32xf32> to vector<2x8x8xf32>
    %61 = vector.extract_strided_slice %15 {offsets = [0, 0, 24], sizes = [2, 8, 8], strides = [1, 1, 1]} : vector<2x8x32xf32> to vector<2x8x8xf32>
    %62 = vector.extract_strided_slice %17 {offsets = [0, 0, 24], sizes = [2, 8, 8], strides = [1, 1, 1]} : vector<2x8x32xf32> to vector<2x8x8xf32>
    %cst_24 = arith.constant dense<0.000000e+00> : vector<2x8x8xf32>
    %63 = tpu.matmul %60, %61, %cst_24 {dimension_numbers = #tpu.dot_dimension_numbers<[2], [2], [1], [1], [0, 0, 0, 1, 1, 1], [0], [0]>} : vector<2x8x8xf32>, vector<2x8x8xf32>, vector<2x8x8xf32> -> vector<2x8x8xf32>
    %cst_25 = arith.constant dense<0xFF800000> : vector<2x8xf32>
    %64 = vector.multi_reduction <maximumf>, %63, %cst_25 [2] : vector<2x8x8xf32> to vector<2x8xf32>
    %65 = vector.shape_cast %64 : vector<2x8xf32> to vector<2x8x1xf32>
    %66 = vector.broadcast %65 : vector<2x8x1xf32> to vector<2x8x8xf32>
    %67 = arith.subf %63, %66 : vector<2x8x8xf32>
    %68 = math.exp %67 : vector<2x8x8xf32>
    %cst_26 = arith.constant dense<0.000000e+00> : vector<2x8xf32>
    %69 = vector.multi_reduction <add>, %68, %cst_26 [2] : vector<2x8x8xf32> to vector<2x8xf32>
    %70 = vector.shape_cast %69 : vector<2x8xf32> to vector<2x8x1xf32>
    %cst_27 = arith.constant dense<0.000000e+00> : vector<2x8x8xf32>
    %71 = tpu.matmul %68, %62, %cst_27 {dimension_numbers = #tpu.dot_dimension_numbers<[2], [1], [1], [2], [0, 0, 0, 1, 1, 2], [0], [0]>} : vector<2x8x8xf32>, vector<2x8x8xf32>, vector<2x8x8xf32> -> vector<2x8x8xf32>
    %72 = vector.broadcast %70 : vector<2x8x1xf32> to vector<2x8x8xf32>
    %73 = arith.divf %71, %72 : vector<2x8x8xf32>
    %74 = tpu.concatenate %31, %45, %59, %73 in 2 : vector<2x8x8xf32>, vector<2x8x8xf32>, vector<2x8x8xf32>, vector<2x8x8xf32> -> vector<2x8x32xf32>
    %75 = vector.shape_cast %74 : vector<2x8x32xf32> to vector<2x256xf32>
    %c0_28 = arith.constant 0 : index
    %c0_29 = arith.constant 0 : index
    %76 = vector.load %arg6[%c0_28, %c0_29] : memref<2x256xf32, #tpu.memory_space<vmem>>, vector<2x256xf32>
    tpu.vector_store %arg6[%c0_28, %c0_29], %75 {strides = array<i32>} : memref<2x256xf32, #tpu.memory_space<vmem>>, vector<2x256xf32>,
    return
  }
  func.func @transform_0(%arg0: i32) -> (i32, i32, i32) {
    %c0_i32 = arith.constant 0 : i32
    %c0_i32_0 = arith.constant 0 : i32
    %c0_i32_1 = arith.constant 0 : i32
    return %arg0, %c0_i32, %c0_i32_0 : i32, i32, i32
  }
  func.func @transform_1(%arg0: i32) -> (i32, i32, i32) {
    %c0_i32 = arith.constant 0 : i32
    %c0_i32_0 = arith.constant 0 : i32
    %c0_i32_1 = arith.constant 0 : i32
    return %arg0, %c0_i32, %c0_i32_0 : i32, i32, i32
  }
  func.func @transform_2(%arg0: i32) -> (i32, i32, i32) {
    %c0_i32 = arith.constant 0 : i32
    %c0_i32_0 = arith.constant 0 : i32
    %c0_i32_1 = arith.constant 0 : i32
    return %arg0, %c0_i32, %c0_i32_0 : i32, i32, i32
  }
  func.func @transform_3(%arg0: i32) -> (i32, i32) {
    %c0_i32 = arith.constant 0 : i32
    %c0_i32_0 = arith.constant 0 : i32
    %c0_i32_1 = arith.constant 0 : i32
    return %c0_i32, %c0_i32_0 : i32, i32
  }
  func.func @transform_4(%arg0: i32) -> (i32, i32) {
    %c0_i32 = arith.constant 0 : i32
    %c0_i32_0 = arith.constant 0 : i32
    %c0_i32_1 = arith.constant 0 : i32
    return %c0_i32, %c0_i32_0 : i32, i32
  }
  func.func @transform_5(%arg0: i32) -> (i32, i32) {
    %c0_i32 = arith.constant 0 : i32
    %c0_i32_0 = arith.constant 0 : i32
    return %arg0, %c0_i32 : i32, i32
  }
}

</mosaic_0001>

<bundles_post_ra>
// kernel: tpu_custom_call.1
= control target key start
LH: loop header
LB: loop body
LE: loop exit
PB: predicated region body
PF: predicated region fallthrough
CT: control target
= control target key end

     0   :  { %10 = vsyncpa [#allocation3], 0  ;;  %s2301_s0 = inlined_call_operand.hbm [shape: f32[2,8,32], index: 0, kind: input, shape index: {}]   ;;  %s2302_s1 = inlined_call_operand.hbm [shape: f32[2,8,32], index: 1, kind: input, shape index: {}]   ;;  %s2303_s2 = inlined_call_operand.hbm [shape: f32[2,8,32], index: 2, kind: input, shape index: {}]   ;;  %s2304_s3 = inlined_call_operand.hbm [shape: f32[32,96], index: 3, kind: input, shape index: {}]   ;;  %s2305_s4 = inlined_call_operand.vmem [shape: f32[1,96], index: 4, kind: input, shape index: {}]   ;;  %s2306_s5 = inlined_call_operand.hbm [shape: f32[2,256], index: 5, kind: output, shape index: {}]  }
   0x1   :  { %11 = vsyncpa [#allocation6], 0 }
   0x2   :  { %12 = vsyncpa [#allocation9], 0 }
   0x3   :  { %13 = vsyncpa [#allocation4], 0  ;;  %s2025_s18 = smov [#allocation5]   ;;  %s2026_s20 = smov [#allocation2]  }
   0x4   :  { %s31_s19 = sshll.u32 %s2025_s18, 4  ;;  %s19_s21 = sshll.u32 %s2026_s20, 4  ;;  %s32_s19 = int_to_ptr.vmem [resolvable:$true] %s31_s19  ;;  %s20_s21 = int_to_ptr.vmem [resolvable:$true] %s19_s21 }
   0x5   :  { %s1925_s22 = scalar_lea.vmem %s32_s19, 256  ;;  %p1930_p1 = scmp.lt.s32.totalorder %s32_s19, %s32_s19 }
   0x6   :  { %p1926_p0 = scmp.ne.s32.totalorder %s32_s19, %s1925_s22  ;;  %p1931_p2 = scmp.lt.s32.totalorder %s1925_s22, %s1925_s22 }
   0x8   :  { %p1932_p3 = por %p1931_p2, %p1930_p1 }
   0xa   :  { %p1933_p4 = pnand %p1932_p3, %p1926_p0 }
   0xc   :  { %1936 = shalt.err (!%p1933_p4)
}
   0xd   :  { %s2027_s23 = smov 128   ;;  %s2028_s24 = smov 8  }
   0xe   :  { %37 = dma.hbm_to_vmem [thread:$0]  %s2302_s1, 256, %s32_s19, [#allocation6], %s2027_s23, %s2027_s23, %s2028_s24  }
   0xf   :  { %s1945_s27 = scalar_lea.vmem %s20_s21, 256  ;;  %p1950_p6 = scmp.lt.s32.totalorder %s20_s21, %s20_s21 }
  0x10   :  { %p1946_p5 = scmp.ne.s32.totalorder %s20_s21, %s1945_s27  ;;  %p1951_p7 = scmp.lt.s32.totalorder %s1945_s27, %s1945_s27 }
  0x12   :  { %p1952_p8 = por %p1951_p7, %p1950_p6 }
  0x14   :  { %p1953_p9 = pnand %p1952_p8, %p1946_p5 }
  0x16   :  { %1956 = shalt.err (!%p1953_p9)
}
  0x17   :  { %25 = dma.hbm_to_vmem [thread:$0]  %s2301_s0, 256, %s20_s21, [#allocation3], %s2027_s23, %s2027_s23, %s2028_s24  }
  0x18   :  { %s2029_s30 = smov [#allocation7]   ;;  %s2030_s7 = smov [#allocation8]  }
  0x19   :  { %s43_s6 = sshll.u32 %s2029_s30, 4  ;;  %s55_s8 = sshll.u32 %s2030_s7, 4  ;;  %s44_s6 = int_to_ptr.vmem [resolvable:$true] %s43_s6  ;;  %s56_s8 = int_to_ptr.vmem [resolvable:$true] %s55_s8 }
  0x1a   :  { %s1965_s1 = scalar_lea.vmem %s44_s6, 256  ;;  %p1970_p11 = scmp.lt.s32.totalorder %s44_s6, %s44_s6 }
  0x1b   :  { %p1966_p10 = scmp.ne.s32.totalorder %s44_s6, %s1965_s1  ;;  %p1971_p12 = scmp.lt.s32.totalorder %s1965_s1, %s1965_s1 }
  0x1d   :  { %p1972_p13 = por %p1971_p12, %p1970_p11 }
  0x1f   :  { %p1973_p0 = pnand %p1972_p13, %p1966_p10 }
  0x21   :  { %1976 = shalt.err (!%p1973_p0)
}
  0x22   :  { %49 = dma.hbm_to_vmem [thread:$0]  %s2303_s2, 256, %s44_s6, [#allocation6], %s2027_s23, %s2027_s23, %s2028_s24  }
  0x23   :  { %s1985_s0 = scalar_lea.vmem %s56_s8, 512  ;;  %p1990_p2 = scmp.lt.s32.totalorder %s56_s8, %s56_s8 }
  0x24   :  { %p1986_p1 = scmp.ne.s32.totalorder %s56_s8, %s1985_s0  ;;  %p1991_p3 = scmp.lt.s32.totalorder %s1985_s0, %s1985_s0 }
  0x26   :  { %p1992_p4 = por %p1991_p3, %p1990_p2 }
  0x28   :  { %p1993_p5 = pnand %p1992_p4, %p1986_p1 }
  0x2a   :  { %1996 = shalt.err (!%p1993_p5)
}
  0x2b   :  { %61 = dma.hbm_to_vmem [thread:$0]  %s2304_s3, 512, %s56_s8, [#allocation9], %s2027_s23, %s2027_s23, %s2028_s24  }
  0x2c   :  { %2017 = dma.done.wait [#allocation3], 256  }
  0x2d   :  { %2018 = vsyncadd [#allocation3], 4294967040 }
  0x2e   :  { %2019 = dma.done.wait [#allocation6], 512  }
  0x2f   :  { %2020 = vsyncadd [#allocation6], 4294966784 }
  0x30   :  { %2021 = dma.done.wait [#allocation9], 512  }
  0x31   :  { %2022 = vsyncadd [#allocation9], 4294966784  ;;  %vm93_vm0 = vcmask 261120   ;;  %v85_v0 = vld [vmem:[#allocation8 + $0x18] sm:$0xff]  ;;  %v84_v1 = vld [vmem:[#allocation8 + $0x10] sm:$0xff]  ;;  %v2031_v10 = vmov 0.0  }
  0x32   :  { %1763 = vmatprep.subr.mxu0 %v85_v0  ;;  %v76_v2 = vld [vmem:[#allocation2] sm:$0xff]  ;;  %v83_v3 = vld [vmem:[#allocation8 + $0x8] sm:$0xff]  ;;  %v82_v4 = vld [vmem:[#allocation8] sm:$0xff]  ;;  %1780 = vmatprep.subr.mxu1 %v2031_v10  ;;  %vm2032_vm1 = vmmov 0   ;;  %s2033_s13 = smov 96   ;;  %s2034_s14 = smov 64  }
  0x33   :  { %1764 = vmatpush3.msra.mxu0 %v85_v0  ;;  %1771 = vmatprep.mubr.msk.f32.mxu0 %vm93_vm0, %v76_v2  ;;  %v77_v5 = vld [vmem:[#allocation2 + $0x8] sm:$0xff]  ;;  %v78_v6 = vld [vmem:[#allocation5] sm:$0xff]  ;;  %v79_v7 = vld [vmem:[#allocation5 + $0x8] sm:$0xff]  ;;  %s2036_s15 = smov 120   ;;  %vm210_vm2 = vcmask 64512   ;;  %s2037_s16 = smov 56  }
  0x34   :  { %1765 = vmatprep.subr.mxu0 %v84_v1  ;;  %v80_v8 = vld [vmem:[#allocation7] sm:$0xff]  ;;  %v81_v9 = vld [vmem:[#allocation7 + $0x8] sm:$0xff]  ;;  %1782 = vmatprep.mubr.msk.f32.mxu1 %vm2032_vm1, %v2031_v10  ;;  %s2038_s17 = smov 80   ;;  %s2039_s18 = smov 112   ;;  %vm1559_vm3 = vcmask 195584   ;;  %vm1556_vm4 = vcmask 130048  }
  0x35   :  { %1766 = vmatpush3.msra.mxu0 %v84_v1  ;;  %v1689_v14 = vld [vmem:[%s2305_s4] ss:$0 sm:$0xff]  ;;  %s2035_s4 = smov 88   ;;  %s2040_s19 = smov 48   ;;  %vm1653_vm5 = vcmask 523264   ;;  %vm1655_vm6 = vcmask 785408  }
  0x36   :  { %1767 = vmatprep.subr.mxu0 %v83_v3  ;;  %s2041_s20 = smov 72   ;;  %s2042_s21 = smov 104  }
  0x37   :  { %1768 = vmatpush3.msra.mxu0 %v83_v3  ;;  %s2043_s22 = smov 40   ;;  %s2044_s23 = smov 16  }
  0x38   :  { %1769 = vmatprep.subr.mxu0 %v82_v4  ;;  %s2045_s25 = smov 24   ;;  %s2049_s26 = smov [#allocation10]  }
  0x39   :  { %1770 = vmatpush3.msra.mxu0 %v82_v4  ;;  %s1678_s27 = sshll.u32 %s2049_s26, 4  ;;  %s1679_s27 = int_to_ptr.vmem [resolvable:$true] %s1678_s27 }
  0x3a   :  { %1772 = vmatmul.mubr.msk.f32.vlgmr.msra.gmra.mxu0 %vm93_vm0, %v77_v5  ;;  %1800 = vmatprep.subr.mxu0 %v2031_v10  ;;  %s1997_s28 = scalar_lea.vmem %s1679_s27, 64  ;;  %p2002_p7 = scmp.lt.s32.totalorder %s1679_s27, %s1679_s27 }
  0x3b   :  { %1774 = vmatprep.mubr.msk.f32.mxu0 %vm93_vm0, %v78_v6  ;;  %p1998_p6 = scmp.ne.s32.totalorder %s1679_s27, %s1997_s28  ;;  %p2003_p8 = scmp.lt.s32.totalorder %s1997_s28, %s1997_s28 }
  0x3d   :  { %p2004_p9 = por %p2003_p8, %p2002_p7 }
  0x3e   :  { %1775 = vmatmul.mubr.msk.f32.gmra.mxu0 %vm93_vm0, %v79_v7 }
  0x3f   :  { %1777 = vmatprep.mubr.msk.f32.mxu0 %vm93_vm0, %v80_v8  ;;  %p2005_p10 = pnand %p2004_p9, %p1998_p6 }
  0x42   :  { %1778 = vmatmul.mubr.msk.f32.gmra.mxu0 %vm93_vm0, %v81_v9 }
  0x43   :  { %1802 = vmatprep.mubr.msk.f32.mxu0 %vm2032_vm1, %v2031_v10 }
  0xfa   :  { %v1773_v11 = vpop.f32.mrf.mxu0 }
  0xfb   :  { %v2138_v23 = vadd.f32 %v1773_v11, %v1689_v14 }
  0xfc   :  { %v178_v12 = vpop.f32.mrf.mxu0 }
  0xfd   :  { %v2135_v22 = vadd.f32 %v1689_v14, %v178_v12 }
  0xfe   :  { %v1776_v13 = vpop.f32.mrf.mxu0 }
  0xff   :  { %v2125_v20 = vadd.f32 %v1776_v13, %v1689_v14 }
 0x100   :  { %v188_v15 = vpop.f32.mrf.mxu0 }
 0x101   :  { %v2119_v16 = vadd.f32 %v1689_v14, %v188_v15 }
 0x102   :  { %v1779_v17 = vpop.f32.mrf.mxu0 }
 0x103   :  { %208 = vrot.lane.b32.xlu0 %v2119_v16, %s2033_s13  ;;  %v2123_v18 = vadd.f32 %v1779_v17, %v1689_v14 }
 0x104   :  { %v198_v19 = vpop.f32.mrf.mxu0 }
 0x105   :  { %v2129_v21 = vadd.f32 %v1689_v14, %v198_v19 }
 0x107   :  { %287 = vrot.lane.b32.xlu0 %v2125_v20, %s2033_s13 }
 0x10b   :  { %383 = vrot.lane.b32.xlu0 %v2129_v21, %s2034_s14 }
 0x10f   :  { %542 = vrot.lane.b32.xlu0 %v2119_v16, %s2035_s4 }
 0x113   :  { %620 = vrot.lane.b32.xlu0 %v2125_v20, %s2035_s4 }
 0x117   :  { %540 = vrot.lane.b32.xlu0 %v2135_v22, %s2036_s15 }
 0x11b   :  { %618 = vrot.lane.b32.xlu0 %v2138_v23, %s2036_s15 }
 0x11f   :  { %714 = vrot.lane.b32.xlu0 %v2129_v21, %s2037_s16 }
 0x175   :  { %v209_v24 = vpop.permute.xlu0 %208 }
 0x176   :  { %1781 = vmatpush3.xpose.msk.msra.mxu1 %vm210_vm2, %v209_v24 }
 0x177   :  { %1785 = vmatprep.subr.mxu1 %v2031_v10 }
 0x179   :  { %v288_v25 = vpop.permute.xlu0 %287  ;;  %1783 = vmatmul.mubr.msk.f32.vlgmr.msra.gmra.mxu1 %vm210_vm2, %v2135_v22 }
 0x17a   :  { %1786 = vmatpush3.xpose.msk.msra.mxu1 %vm210_vm2, %v288_v25  ;;  %1787 = vmatprep.mubr.msk.f32.mxu1 %vm2032_vm1, %v2031_v10 }
 0x17b   :  { %1790 = vmatprep.subr.mxu1 %v2031_v10 }
 0x17d   :  { %v384_v26 = vpop.permute.xlu0 %383  ;;  %1788 = vmatmul.mubr.msk.f32.vlgmr.msra.gmra.mxu1 %vm210_vm2, %v2138_v23 }
 0x17e   :  { %1791 = vmatpush3.msra.mxu1 %v384_v26  ;;  %1792 = vmatprep.mubr.msk.f32.mxu1 %vm2032_vm1, %v2031_v10 }
 0x17f   :  { %1795 = vmatprep.subr.mxu1 %v2031_v10 }
 0x181   :  { %v543_v27 = vpop.permute.xlu0 %542 }
 0x182   :  { %1801 = vmatpush3.xpose.msk.msra.mxu0 %vm210_vm2, %v543_v27 }
 0x183   :  { %1810 = vmatprep.subr.mxu0 %v2031_v10 }
 0x185   :  { %v621_v28 = vpop.permute.xlu0 %620 }
 0x189   :  { %v541_v29 = vpop.permute.xlu0 %540 }
 0x18a   :  { %1803 = vmatmul.mubr.msk.f32.vlgmr.msra.gmra.mxu0 %vm210_vm2, %v541_v29 }
 0x18b   :  { %1812 = vmatprep.mubr.msk.f32.mxu0 %vm2032_vm1, %v2031_v10 }
 0x18d   :  { %v619_v36 = vpop.permute.xlu0 %618 }
 0x191   :  { %v715_v39 = vpop.permute.xlu0 %714 }
 0x192   :  { %1811 = vmatpush3.msra.mxu0 %v715_v39 }
 0x193   :  { %1820 = vmatprep.subr.mxu0 %v2031_v10 }
 0x239   :  { %v282_v30 = vpop.f32.mrf.mxu1 }
 0x23a   :  { %v364_v31 = vsel %vm210_vm2, %v282_v30, -inf }
 0x23b   :  { %365 = vmax.xlane.f32.xlu1 %v364_v31  ;;  %v1784_v32 = vpop.f32.mrf.mxu1 }
 0x23d   :  { %v360_v33 = vpop.f32.mrf.mxu1 }
 0x23e   :  { %v367_v34 = vsel %vm210_vm2, %v360_v33, -inf }
 0x23f   :  { %368 = vmax.xlane.f32.xlu1 %v367_v34  ;;  %v1789_v35 = vpop.f32.mrf.mxu1 }
 0x24a   :  { %v614_v37 = vpop.f32.mrf.mxu0 }
 0x24b   :  { %v696_v40 = vsel %vm210_vm2, %v614_v37, -inf }
 0x24c   :  { %v1804_v38 = vpop.f32.mrf.mxu0 }
 0x250   :  { %460 = vrot.lane.b32.xlu1 %v2123_v18, %s2034_s14 }
 0x274   :  { %697 = vmax.xlane.f32.xlu1 %v696_v40 }
 0x285   :  { %790 = vrot.lane.b32.xlu1 %v2123_v18, %s2037_s16 }
 0x289   :  { %872 = vrot.lane.b32.xlu1 %v2119_v16, %s2038_s17 }
 0x28d   :  { %870 = vrot.lane.b32.xlu1 %v2135_v22, %s2039_s18 }
 0x2c4   :  { %v366_v41 = vpop.xlane.xlu1 %365 }
 0x2c5   :  { %v370_v42 = vsub.f32 %v282_v30, %v366_v41 }
 0x2c7   :  { %v372_v43 = vmul.f32 1.442695, %v370_v42 }
 0x2c8   :  { %v369_v44 = vpop.xlane.xlu1 %368 }
 0x2c9   :  { %1885 = vpow2.f32 %v372_v43  ;;  %v371_v45 = vsub.f32 %v360_v33, %v369_v44 }
 0x2cb   :  { %v374_v46 = vmul.f32 1.442695, %v371_v45 }
 0x2cc   :  { %v461_v48 = vpop.permute.xlu1 %460 }
 0x2cd   :  { %1887 = vpow2.f32 %v374_v46 }
 0x2d6   :  { %v2171_v47 = vpop.eup %1885 }
 0x2d7   :  { %1793 = vmatmul.mubr.msk.f32.vlgmr.msra.gmra.mxu1 %vm210_vm2, %v2171_v47 }
 0x2d8   :  { %1796 = vmatpush3.msra.mxu1 %v461_v48  ;;  %1797 = vmatprep.mubr.msk.f32.mxu1 %vm2032_vm1, %v2031_v10 }
 0x2d9   :  { %1805 = vmatprep.subr.mxu1 %v2031_v10 }
 0x2da   :  { %v2178_v49 = vpop.eup %1887 }
 0x2db   :  { %1798 = vmatmul.mubr.msk.f32.vlgmr.msra.gmra.mxu1 %vm210_vm2, %v2178_v49 }
 0x2dc   :  { %1806 = vmatpush3.xpose.msk.msra.mxu1 %vm210_vm2, %v621_v28  ;;  %1807 = vmatprep.mubr.msk.f32.mxu1 %vm2032_vm1, %v2031_v10 }
 0x2dd   :  { %1815 = vmatprep.subr.mxu1 %v2031_v10 }
 0x2df   :  { %1808 = vmatmul.mubr.msk.f32.vlgmr.msra.gmra.mxu1 %vm210_vm2, %v619_v36 }
 0x2e0   :  { %1817 = vmatprep.mubr.msk.f32.mxu1 %vm2032_vm1, %v2031_v10 }
 0x2fd   :  { %v698_v50 = vpop.xlane.xlu1 %697 }
 0x2fe   :  { %v702_v51 = vsub.f32 %v614_v37, %v698_v50 }
 0x300   :  { %v704_v52 = vmul.f32 1.442695, %v702_v51 }
 0x301   :  { %v791_v53 = vpop.permute.xlu1 %790 }
 0x302   :  { %1889 = vpow2.f32 %v704_v52  ;;  %1816 = vmatpush3.msra.mxu1 %v791_v53 }
 0x303   :  { %1825 = vmatprep.subr.mxu1 %v2031_v10 }
 0x305   :  { %v873_v54 = vpop.permute.xlu1 %872 }
 0x309   :  { %v871_v56 = vpop.permute.xlu1 %870 }
 0x30f   :  { %v2190_v55 = vpop.eup %1889 }
 0x310   :  { %1813 = vmatmul.mubr.msk.f32.vlgmr.msra.gmra.mxu0 %vm210_vm2, %v2190_v55  ;;  %v708_v34 = vsel %vm210_vm2, %v2190_v55, 0.0 }
 0x311   :  { %1821 = vmatpush3.xpose.msk.msra.mxu0 %vm210_vm2, %v873_v54  ;;  %1822 = vmatprep.mubr.msk.f32.mxu0 %vm2032_vm1, %v2031_v10  ;;  %v376_v54 = vsel %vm210_vm2, %v2171_v47, 0.0 }
 0x312   :  { %1830 = vmatprep.subr.mxu0 %v2031_v10 }
 0x314   :  { %1823 = vmatmul.mubr.msk.f32.vlgmr.msra.gmra.mxu0 %vm210_vm2, %v871_v56 }
 0x315   :  { %1832 = vmatprep.mubr.msk.f32.mxu0 %vm2032_vm1, %v2031_v10 }
 0x397   :  { %v2201_v57 = vpop.f32.mrf.mxu1 }
 0x399   :  { %v1794_v58 = vpop.f32.mrf.mxu1 }
 0x39b   :  { %v2203_v59 = vpop.f32.mrf.mxu1 }
 0x39d   :  { %v1799_v60 = vpop.f32.mrf.mxu1 }
 0x39f   :  { %v692_v61 = vpop.f32.mrf.mxu1 }
 0x3a0   :  { %v699_v62 = vsel %vm210_vm2, %v692_v61, -inf }
 0x3a1   :  { %700 = vmax.xlane.f32.xlu0 %v699_v62  ;;  %v1809_v63 = vpop.f32.mrf.mxu1 }
 0x3b7   :  { %950 = vrot.lane.b32.xlu0 %v2125_v20, %s2038_s17 }
 0x3bb   :  { %948 = vrot.lane.b32.xlu0 %v2138_v23, %s2039_s18 }
 0x3bf   :  { %1044 = vrot.lane.b32.xlu0 %v2129_v21, %s2040_s19 }
 0x3d0   :  { %v2211_v0 = vpop.f32.mrf.mxu0 }
 0x3d2   :  { %v1814_v1 = vpop.f32.mrf.mxu0 }
 0x3d4   :  { %v944_v2 = vpop.f32.mrf.mxu0 }
 0x3d5   :  { %v1026_v3 = vsel %vm210_vm2, %v944_v2, -inf }
 0x3d6   :  { %1027 = vmax.xlane.f32.xlu1 %v1026_v3  ;;  %v1824_v4 = vpop.f32.mrf.mxu0 }
 0x3e7   :  { %1120 = vrot.lane.b32.xlu1 %v2123_v18, %s2040_s19 }
 0x3eb   :  { %1202 = vrot.lane.b32.xlu1 %v2119_v16, %s2041_s20 }
 0x3ef   :  { %1200 = vrot.lane.b32.xlu1 %v2135_v22, %s2042_s21 }
 0x42a   :  { %v701_v5 = vpop.xlane.xlu0 %700 }
 0x42b   :  { %v703_v6 = vsub.f32 %v692_v61, %v701_v5 }
 0x42d   :  { %v706_v7 = vmul.f32 1.442695, %v703_v6 }
 0x42e   :  { %v951_v8 = vpop.permute.xlu0 %950 }
 0x42f   :  { %1891 = vpow2.f32 %v706_v7 }
 0x432   :  { %v949_v9 = vpop.permute.xlu0 %948 }
 0x436   :  { %v1045_v11 = vpop.permute.xlu0 %1044 }
 0x437   :  { %1831 = vmatpush3.msra.mxu0 %v1045_v11 }
 0x438   :  { %1840 = vmatprep.subr.mxu0 %v2031_v10 }
 0x43c   :  { %v2220_v12 = vpop.eup %1891 }
 0x43d   :  { %1818 = vmatmul.mubr.msk.f32.vlgmr.msra.gmra.mxu1 %vm210_vm2, %v2220_v12  ;;  %v711_v50 = vsel %vm210_vm2, %v2220_v12, 0.0 }
 0x43e   :  { %1826 = vmatpush3.xpose.msk.msra.mxu1 %vm210_vm2, %v951_v8  ;;  %1827 = vmatprep.mubr.msk.f32.mxu1 %vm2032_vm1, %v2031_v10 }
 0x43f   :  { %1835 = vmatprep.subr.mxu1 %v2031_v10 }
 0x441   :  { %1828 = vmatmul.mubr.msk.f32.vlgmr.msra.gmra.mxu1 %vm210_vm2, %v949_v9 }
 0x442   :  { %1837 = vmatprep.mubr.msk.f32.mxu1 %vm2032_vm1, %v2031_v10 }
 0x45f   :  { %v1028_v13 = vpop.xlane.xlu1 %1027 }
 0x460   :  { %v1032_v14 = vsub.f32 %v944_v2, %v1028_v13 }
 0x462   :  { %v1034_v15 = vmul.f32 1.442695, %v1032_v14 }
 0x463   :  { %v1121_v16 = vpop.permute.xlu1 %1120 }
 0x464   :  { %1893 = vpow2.f32 %v1034_v15  ;;  %1836 = vmatpush3.msra.mxu1 %v1121_v16 }
 0x465   :  { %1845 = vmatprep.subr.mxu1 %v2031_v10 }
 0x467   :  { %v1203_v17 = vpop.permute.xlu1 %1202 }
 0x46b   :  { %v1201_v22 = vpop.permute.xlu1 %1200 }
 0x471   :  { %v1894_v19 = vpop.eup %1893 }
 0x472   :  { %1833 = vmatmul.mubr.msk.f32.vlgmr.msra.gmra.mxu0 %vm210_vm2, %v1894_v19  ;;  %v1038_v51 = vsel %vm210_vm2, %v1894_v19, 0.0 }
 0x473   :  { %1841 = vmatpush3.xpose.msk.msra.mxu0 %vm210_vm2, %v1203_v17  ;;  %1842 = vmatprep.mubr.msk.f32.mxu0 %vm2032_vm1, %v2031_v10 }
 0x474   :  { %1850 = vmatprep.subr.mxu0 %v2031_v10 }
 0x476   :  { %1843 = vmatmul.mubr.msk.f32.vlgmr.msra.gmra.mxu0 %vm210_vm2, %v1201_v22 }
 0x477   :  { %1852 = vmatprep.mubr.msk.f32.mxu0 %vm2032_vm1, %v2031_v10 }
 0x4fd   :  { %v2240_v24 = vpop.f32.mrf.mxu1 }
 0x4ff   :  { %v1819_v25 = vpop.f32.mrf.mxu1 }
 0x501   :  { %v1022_v26 = vpop.f32.mrf.mxu1 }
 0x502   :  { %v1029_v27 = vsel %vm210_vm2, %v1022_v26, -inf }
 0x503   :  { %1030 = vmax.xlane.f32.xlu0 %v1029_v27  ;;  %v1829_v28 = vpop.f32.mrf.mxu1 }
 0x519   :  { %1280 = vrot.lane.b32.xlu0 %v2125_v20, %s2041_s20 }
 0x51d   :  { %1278 = vrot.lane.b32.xlu0 %v2138_v23, %s2042_s21 }
 0x532   :  { %v2247_v29 = vpop.f32.mrf.mxu0 }
 0x534   :  { %v1834_v30 = vpop.f32.mrf.mxu0 }
 0x535   :  { %v2046_v30 = vmov 1983009808  }
 0x536   :  { %v1274_v31 = vpop.f32.mrf.mxu0 }
 0x537   :  { %v1356_v32 = vsel %vm210_vm2, %v1274_v31, -inf }
 0x538   :  { %1357 = vmax.xlane.f32.xlu1 %v1356_v32  ;;  %v1844_v33 = vpop.f32.mrf.mxu0  ;;  %v1566_v32 = vlaneseq }
 0x549   :  { %1450 = vrot.lane.b32.xlu1 %v2123_v18, %s2043_s22 }
 0x56d   :  { %709 = vadd.xlane.f32.xlu1 %v708_v34 }
 0x58c   :  { %v1031_v35 = vpop.xlane.xlu0 %1030 }
 0x58d   :  { %v1033_v20 = vsub.f32 %v1022_v26, %v1031_v35 }
 0x58f   :  { %v1036_v36 = vmul.f32 1.442695, %v1033_v20  ;;  %v1567_v20 = vshrl.u32 %v1566_v32, 7 }
 0x590   :  { %v1281_v23 = vpop.permute.xlu0 %1280 }
 0x591   :  { %1895 = vpow2.f32 %v1036_v36 }
 0x594   :  { %v1279_v18 = vpop.permute.xlu0 %1278 }
 0x59e   :  { %v1896_v37 = vpop.eup %1895 }
 0x59f   :  { %1838 = vmatmul.mubr.msk.f32.vlgmr.msra.gmra.mxu1 %vm210_vm2, %v1896_v37  ;;  %v1041_v38 = vsel %vm210_vm2, %v1896_v37, 0.0 }
 0x5a0   :  { %1846 = vmatpush3.xpose.msk.msra.mxu1 %vm210_vm2, %v1281_v23  ;;  %1042 = vadd.xlane.f32.xlu1 %v1041_v38  ;;  %v2047_v23 = vmov 1934713408  }
 0x5a1   :  { %1847 = vmatprep.mubr.msk.f32.mxu1 %vm2032_vm1, %v2031_v10  ;;  %1855 = vmatprep.subr.mxu1 %v2031_v10  ;;  %v1595_v37 = vunpack.c.l.s4 %v2047_v23 }
 0x5a3   :  { %1848 = vmatmul.mubr.msk.f32.vlgmr.msra.gmra.mxu1 %vm210_vm2, %v1279_v18 }
 0x5a4   :  { %1857 = vmatprep.mubr.msk.f32.mxu1 %vm2032_vm1, %v2031_v10 }
 0x5c1   :  { %v1358_v39 = vpop.xlane.xlu1 %1357 }
 0x5c2   :  { %v1362_v46 = vsub.f32 %v1274_v31, %v1358_v39  ;;  %v1564_v31 = vunpack.c.l.s4 %v2046_v30 }
 0x5c4   :  { %v1364_v48 = vmul.f32 1.442695, %v1362_v46  ;;  %v1565_v35 = vunpack.c.0.s8 %v1564_v31 }
 0x5c5   :  { %v1451_v40 = vpop.permute.xlu1 %1450 }
 0x5c6   :  { %1856 = vmatpush3.msra.mxu1 %v1451_v40  ;;  %1897 = vpow2.f32 %v1364_v48 }
 0x5d3   :  { %v1898_v52 = vpop.eup %1897 }
 0x5d4   :  { %v1368_v53 = vsel %vm210_vm2, %v1898_v52, 0.0 }
 0x5f6   :  { %v710_v55 = vpop.xlane.xlu1 %709 }
 0x5f7   :  { %1899 = vrcp.f32 %v710_v55 }
 0x604   :  { %v1900_v56 = vpop.eup %1899 }
 0x605   :  { %v867_v58 = vmul.f32 %v1900_v56, %v2211_v0  ;;  %v379_v0 = vsel %vm210_vm2, %v2178_v49, 0.0 }
 0x65f   :  { %v1192_v41 = vpop.f32.mrf.mxu1 }
 0x661   :  { %v1839_v42 = vpop.f32.mrf.mxu1 }
 0x663   :  { %v1352_v43 = vpop.f32.mrf.mxu1 }
 0x664   :  { %v1359_v44 = vsel %vm210_vm2, %v1352_v43, -inf }
 0x665   :  { %1360 = vmax.xlane.f32.xlu0 %v1359_v44  ;;  %v1849_v45 = vpop.f32.mrf.mxu1 }
 0x67b   :  { %1374 = vrot.lane.b32.xlu0 %v2129_v21, %s2043_s22  ;;  %v1043_v21 = vpop.xlane.xlu1 %1042 }
 0x67c   :  { %1901 = vrcp.f32 %v1043_v21 }
 0x689   :  { %v1902_v60 = vpop.eup %1901 }
 0x68a   :  { %v1199_v61 = vmul.f32 %v1902_v60, %v1192_v41 }
 0x69a   :  { %712 = vadd.xlane.f32.xlu0 %v711_v50 }
 0x69e   :  { %1039 = vadd.xlane.f32.xlu0 %v1038_v51 }
 0x6a2   :  { %1369 = vadd.xlane.f32.xlu0 %v1368_v53 }
 0x6a6   :  { %377 = vadd.xlane.f32.xlu0 %v376_v54 }
 0x6bc   :  { %1532 = vrot.lane.b32.xlu0 %v867_v58, %s2028_s24 }
 0x6c0   :  { %1542 = vrot.lane.b32.xlu0 %v1199_v61, %s2044_s23 }
 0x6ee   :  { %v1361_v62 = vpop.xlane.xlu0 %1360 }
 0x6ef   :  { %v1363_v63 = vsub.f32 %v1352_v43, %v1361_v62  ;;  %v1568_v43 = vsub.s32 %v1565_v35, %v1567_v20 }
 0x6f1   :  { %v1366_v1 = vmul.f32 1.442695, %v1363_v63 }
 0x6f2   :  { %v1375_v2 = vpop.permute.xlu0 %1374 }
 0x6f3   :  { %1903 = vpow2.f32 %v1366_v1  ;;  %1851 = vmatpush3.msra.mxu0 %v1375_v2 }
 0x6f4   :  { %1853 = vmatmul.mubr.msk.f32.vlgmr.msra.gmra.mxu0 %vm210_vm2, %v1898_v52 }
 0x700   :  { %v1904_v47 = vpop.eup %1903 }
 0x701   :  { %1858 = vmatmul.mubr.msk.f32.vlgmr.msra.gmra.mxu1 %vm210_vm2, %v1904_v47  ;;  %v1371_v3 = vsel %vm210_vm2, %v1904_v47, 0.0 }
 0x702   :  { %1372 = vadd.xlane.f32.xlu1 %v1371_v3 }
 0x706   :  { %380 = vadd.xlane.f32.xlu1 %v379_v0 }
 0x723   :  { %v713_v4 = vpop.xlane.xlu0 %712 }
 0x724   :  { %1905 = vrcp.f32 %v713_v4 }
 0x727   :  { %v1040_v5 = vpop.xlane.xlu0 %1039 }
 0x728   :  { %1907 = vrcp.f32 %v1040_v5 }
 0x72b   :  { %v1370_v11 = vpop.xlane.xlu0 %1369 }
 0x72c   :  { %1909 = vrcp.f32 %v1370_v11 }
 0x731   :  { %v1906_v6 = vpop.eup %1905 }
 0x732   :  { %v869_v7 = vmul.f32 %v1906_v6, %v2240_v24  ;;  %v378_v24 = vpop.xlane.xlu0 %377 }
 0x734   :  { %1534 = vrot.lane.b32.xlu1 %v869_v7, %s2028_s24  ;;  %s2048_s24 = smov 32  }
 0x735   :  { %v1908_v8 = vpop.eup %1907 }
 0x736   :  { %v1197_v9 = vmul.f32 %v1908_v8, %v2247_v29  ;;  %v1533_v28 = vpop.permute.xlu0 %1532 }
 0x738   :  { %1540 = vrot.lane.b32.xlu1 %v1197_v9, %s2044_s23 }
 0x739   :  { %v1910_v13 = vpop.eup %1909 }
 0x73a   :  { %v1543_v39 = vpop.permute.xlu0 %1542 }
 0x78b   :  { %v1373_v12 = vpop.xlane.xlu1 %1372 }
 0x78c   :  { %1911 = vrcp.f32 %v1373_v12 }
 0x78d   :  { %1913 = vrcp.f32 %v378_v24 }
 0x78f   :  { %v381_v25 = vpop.xlane.xlu1 %380 }
 0x790   :  { %1915 = vrcp.f32 %v381_v25 }
 0x799   :  { %v1912_v16 = vpop.eup %1911 }
 0x79a   :  { %v1914_v27 = vpop.eup %1913 }
 0x79b   :  { %v537_v33 = vmul.f32 %v1914_v27, %v2201_v57  ;;  %v1596_v57 = vunpack.c.0.s8 %v1595_v37 }
 0x79d   :  { %v1916_v34 = vpop.eup %1915  ;;  %v1554_v38 = vsel %vm210_vm2, %v537_v33, %v1533_v28 }
 0x79e   :  { %v539_v18 = vmul.f32 %v1916_v34, %v2203_v59  ;;  %v1599_v59 = vsub.s32 %v1596_v57, %v1567_v20 }
 0x7a6   :  { %v1535_v26 = vpop.permute.xlu1 %1534 }
 0x7a7   :  { %v1555_v41 = vsel %vm210_vm2, %v539_v18, %v1535_v26 }
 0x7a8   :  { %v1558_v45 = vsel %vm1556_vm4, %v1555_v41, %v1543_v39 }
 0x7aa   :  { %v1541_v29 = vpop.permute.xlu1 %1540 }
 0x7ab   :  { %v1557_v40 = vsel %vm1556_vm4, %v1554_v38, %v1541_v29 }
 0x7b4   :  { %v1446_v49 = vpop.f32.mrf.mxu0 }
 0x7b5   :  { %v1527_v14 = vmul.f32 %v1910_v13, %v1446_v49 }
 0x7b6   :  { %v1854_v15 = vpop.f32.mrf.mxu0 }
 0x7b7   :  { %1548 = vrot.lane.b32.xlu1 %v1527_v14, %s2045_s25 }
 0x7c1   :  { %v1522_v17 = vpop.f32.mrf.mxu1 }
 0x7c2   :  { %v1529_v19 = vmul.f32 %v1912_v16, %v1522_v17 }
 0x7c3   :  { %v1859_v22 = vpop.f32.mrf.mxu1 }
 0x7c4   :  { %1550 = vrot.lane.b32.xlu0 %v1529_v19, %s2045_s25 }
 0x829   :  { %v1549_v36 = vpop.permute.xlu1 %1548 }
 0x82a   :  { %v1560_v42 = vsel %vm1559_vm3, %v1557_v40, %v1549_v36 }
 0x82b   :  { %v1562_v44 = vcombine.high %v1560_v42, %v2031_v10  ;;  %v1569_v50 = vrot.slane %v1560_v42, %v1568_v43 }
 0x82d   :  { %v1576_v53 = vrot.slane %v1562_v44, %v1568_v43 }
 0x836   :  { %v1551_v46 = vpop.permute.xlu0 %1550 }
 0x837   :  { %v1561_v48 = vsel %vm1559_vm3, %v1558_v45, %v1551_v46 }
 0x838   :  { %v1577_v51 = vcombine.high %v1561_v48, %v2031_v10  ;;  %v1584_v52 = vrot.slane %v1561_v48, %v1568_v43 }
 0x83a   :  { %v1591_v54 = vrot.slane %v1577_v51, %v1568_v43  ;;  %v1592_v55 = vcombine.low %v1569_v50, %v1584_v52  ;;  %v1593_v21 = vcombine.high %v1569_v50, %v1584_v52 }
 0x83c   :  { %v1608_v56 = vcombine.low %v1576_v53, %v1591_v54  ;;  %v1607_v58 = vrot.slane %v1593_v21, %v1599_v59  ;;  %v1609_v60 = vcombine.high %v1576_v53, %v1591_v54  ;;  %v1600_v61 = vrot.slane %v1592_v55, %v1599_v59 }
 0x83e   :  { %1633 = vrot.lane.b32.xlu1 %v1607_v58, %s2034_s14  ;;  %v1623_v62 = vrot.slane %v1609_v60, %v1599_v59  ;;  %v1616_v63 = vrot.slane %v1608_v56, %v1599_v59  ;;  %v1624_v1 = vcombine.high %v1600_v61, %v2031_v10  ;;  %v1625_v47 = vcombine.high %v1607_v58, %v2031_v10 }
 0x840   :  { %1645 = vrot.lane.b32.xlu0 %v1623_v62, %s2034_s14  ;;  %v1626_v2 = vcombine.high %v1616_v63, %v2031_v10  ;;  %v1627_v3 = vcombine.high %v1623_v62, %v2031_v10 }
 0x842   :  { %1629 = vrot.lane.b32.xlu1 %v1624_v1, %s2048_s24 }
 0x844   :  { %1641 = vrot.lane.b32.xlu0 %v1626_v2, %s2048_s24 }
 0x846   :  { %1637 = vrot.lane.b32.xlu1 %v1625_v47, %s2033_s13 }
 0x848   :  { %1649 = vrot.lane.b32.xlu0 %v1627_v3, %s2033_s13 }
 0x8b0   :  { %v1634_v0 = vpop.permute.xlu1 %1633 }
 0x8b2   :  { %v1646_v4 = vpop.permute.xlu0 %1645 }
 0x8b4   :  { %v1630_v5 = vpop.permute.xlu1 %1629 }
 0x8b5   :  { %v1652_v7 = vsel %vm93_vm0, %v1600_v61, %v1630_v5 }
 0x8b6   :  { %v1642_v6 = vpop.permute.xlu0 %1641  ;;  %v1654_v11 = vsel %vm1653_vm5, %v1652_v7, %v1634_v0 }
 0x8b7   :  { %v1657_v8 = vsel %vm93_vm0, %v1616_v63, %v1642_v6 }
 0x8b8   :  { %v1638_v9 = vpop.permute.xlu1 %1637  ;;  %v1658_v12 = vsel %vm1653_vm5, %v1657_v8, %v1646_v4 }
 0x8b9   :  { %v1656_v49 = vsel %vm1655_vm6, %v1654_v11, %v1638_v9 }
 0x8ba   :  { %v1650_v13 = vpop.permute.xlu0 %1649 }
 0x8bb   :  { %v1659_v10 = vsel %vm1655_vm6, %v1658_v12, %v1650_v13 }
 0x8bc   :  { %v1662_v14 = vcombine.low %v1656_v49, %v1659_v10 }
 0x8be   :  { %1720 = vst.sshfl [vmem:[#allocation10] sm:$0x33 pattern:$0x76325410] %v1662_v14 }
 0x8bf   :  { %2008 = shalt.err (!%p2005_p10)
}
 0x8c0   :  { %1681 = dma.vmem_to_hbm [thread:$0]  %s1679_s27, 64, %s2306_s5, [#allocation4]  }
 0x8c1   :  { %2023 = dma.done.wait [#allocation4], 64  }
 0x8c2   :  { %2024 = vsyncadd [#allocation4], 4294967232 }
 0x8c3   :  { %1685 = vsyncpa [#allocation3], 1 }
 0x8c4   :  { %1686 = vsyncpa [#allocation6], 1 }
 0x8c5   :  { %1687 = vsyncpa [#allocation9], 1 }
 0x8c6   :  { %1688 = vsyncpa [#allocation4], 1 }

</bundles_post_ra>
